<compile_context>
chip_gen: v6e
topology: v6e:2x2x1
jax: 0.10.0
libtpu: 0.0.40
codegen_flags: <defaults>
</compile_context>

<pallas_src>
import jax
import jax.numpy as jnp
from jax.experimental import pallas as pl
from jax.experimental.pallas import tpu as pltpu


def _round_up(x, m):
    return ((x + m - 1) // m) * m


def _pad_to(x, target_shape):
    pads = [(0, t - s) for s, t in zip(x.shape, target_shape)]
    if any(p[1] for p in pads):
        x = jnp.pad(x, pads)
    return x


def _pick_tn(gpt2_pad, target=512):
    """Largest multiple of 128 that divides gpt2_pad and is <= target."""
    lanes = gpt2_pad // 128
    best = 1
    for d in range(1, lanes + 1):
        if lanes % d == 0 and d * 128 <= target:
            best = d
    return best * 128


def _projection_kernel(x_ref, w_ref, b_ref, o_ref):
    # One (M-tile, N-tile) of the projection.  x arrives in its original dtype
    # (typically f32) and is cast to the weight dtype (bf16) on the VPU, which
    # has slack under the MXU; accumulation is f32, bias added in f32, then the
    # result is cast to the (bf16) output dtype.
    x = x_ref[...].astype(w_ref.dtype)
    acc = jnp.dot(x, w_ref[...], preferred_element_type=jnp.float32)
    o_ref[...] = (acc + b_ref[...]).astype(o_ref.dtype)


def prepare_projection_params(weight, bias, compute_dtype=jnp.bfloat16):
    """One-time (load-time) parameter prep.

    weight: (gpt2_dim, clip_dim)  -- PyTorch nn.Linear layout
    bias:   (gpt2_dim,)
    Returns (w_t, b2, gpt2_dim) where
      w_t: (clip_pad, gpt2_pad) in compute_dtype (transposed + lane-padded)
      b2:  (1, gpt2_pad) float32
    """
    gpt2_dim, clip_dim = weight.shape
    clip_pad = _round_up(clip_dim, 128)
    gpt2_pad = _round_up(gpt2_dim, 128)

    w_t = _pad_to(weight.T.astype(compute_dtype), (clip_pad, gpt2_pad))
    b2 = _pad_to(bias.astype(jnp.float32).reshape(1, gpt2_dim), (1, gpt2_pad))
    return w_t, b2, gpt2_dim


def projection_matrix_forward(visual_features, w_t, b2, gpt2_dim, *,
                              out_dtype=jnp.bfloat16, tm_max=256):
    """visual_features: (..., clip_dim); w_t/b2 from prepare_projection_params.
    Returns (..., gpt2_dim) in out_dtype (default bf16)."""
    clip_dim = visual_features.shape[-1]
    clip_pad, gpt2_pad = w_t.shape
    lead_shape = visual_features.shape[:-1]

    x = visual_features.reshape(-1, clip_dim)
    M = x.shape[0]

    # Pad rows only to the bf16 sublane pack (16), not to the M tile; Pallas
    # masks the ragged last block of the grid.
    M_pad = _round_up(max(M, 16), 16)
    tm = M_pad if M_pad <= tm_max else tm_max          # tm is a multiple of 16
    m_tiles = pl.cdiv(M_pad, tm)

    tn = _pick_tn(gpt2_pad)                            # lane-dense N tile
    n_tiles = gpt2_pad // tn

    # No dtype change on the host: K/M zero-padding only (no-op when already
    # aligned); the bf16 cast happens inside the kernel.
    x_p = _pad_to(x, (M_pad, clip_pad))

    out_shape = jax.ShapeDtypeStruct((M_pad, gpt2_pad), out_dtype)
    out_isize = jnp.dtype(out_dtype).itemsize

    flops = 2 * M_pad * clip_pad * gpt2_pad
    bytes_accessed = (x_p.size * x_p.dtype.itemsize
                      + w_t.size * w_t.dtype.itemsize
                      + b2.size * b2.dtype.itemsize
                      + M_pad * gpt2_pad * out_isize)
    cost = pl.CostEstimate(flops=flops, transcendentals=0,
                           bytes_accessed=bytes_accessed)

    def build(param_pipeline_mode):
        # Explicit VMEM budget (x/out double-buffered, weight 1 or 2 buffers),
        # with headroom, capped below v7x's 64 MiB physical VMEM.
        w_bufs = 1 if param_pipeline_mode is not None else 2
        vmem_bytes = (2 * tm * clip_pad * x_p.dtype.itemsize
                      + w_bufs * clip_pad * tn * w_t.dtype.itemsize
                      + 2 * tn * b2.dtype.itemsize
                      + 2 * tm * tn * out_isize)
        vmem_limit = int(min(max(2 * vmem_bytes, 4 << 20) + (2 << 20), 48 << 20))

        in_specs = [
            pl.BlockSpec((tm, clip_pad), lambda j, i: (i, 0)),     # x row tile
            pl.BlockSpec((clip_pad, tn), lambda j, i: (0, j),      # weight col tile
                         pipeline_mode=param_pipeline_mode),
            pl.BlockSpec((1, tn), lambda j, i: (0, j),             # bias col tile
                         pipeline_mode=param_pipeline_mode),
        ]
        out_specs = pl.BlockSpec((tm, tn), lambda j, i: (i, j))

        return pl.pallas_call(
            _projection_kernel,
            out_shape=out_shape,
            grid_spec=pltpu.PrefetchScalarGridSpec(
                num_scalar_prefetch=0,
                grid=(n_tiles, m_tiles),       # N outer, M inner (weight stays resident)
                in_specs=in_specs,
                out_specs=out_specs,
            ),
            compiler_params=pltpu.CompilerParams(
                dimension_semantics=("parallel", "parallel"),
                vmem_limit_bytes=vmem_limit,
            ),
            cost_estimate=cost,
        )

    # Single-buffer the weight/bias only when their block index is constant
    # across the whole grid (single N tile).
    single_buffer = pl.Buffered(1) if n_tiles == 1 else None
    try:
        out = build(single_buffer)(x_p, w_t, b2)
    except Exception:
        # Fallback: default double-buffering if pipeline_mode is unsupported.
        out = build(None)(x_p, w_t, b2)

    return out[:M, :gpt2_dim].reshape(*lead_shape, gpt2_dim)


def reference_forward(visual_features, weight, bias):
    # Pure-JAX f32 reference of nn.Linear (eval-mode dropout == identity).
    return jnp.einsum("...c,oc->...o", visual_features, weight) + bias


if __name__ == "__main__":
    key = jax.random.PRNGKey(0)
    k_x, k_w, k_b = jax.random.split(key, 3)

    batch, seq = 2, 8
    clip_dim, gpt2_dim = 32, 64

    # Deterministic synthetic parameters (PyTorch Linear shapes: W (out,in), b (out,))
    visual_features = jax.random.normal(k_x, (batch, seq, clip_dim), dtype=jnp.float32)
    weight = jax.random.normal(k_w, (gpt2_dim, clip_dim), dtype=jnp.float32) * 0.02
    bias = jax.random.normal(k_b, (gpt2_dim,), dtype=jnp.float32) * 0.02

    # One-time (load-time) prep: transpose + pad + bf16 cast of the weight.
    w_t, b2, out_dim = prepare_projection_params(weight, bias)

    out = projection_matrix_forward(visual_features, w_t, b2, out_dim)
    out = jax.block_until_ready(out)

    ref = reference_forward(visual_features, weight, bias)
    assert out.shape == (batch, seq, gpt2_dim)
    assert out.dtype == jnp.bfloat16
    # bf16 matmul with f32 accumulation + bf16 output vs f32 reference.
    assert jnp.allclose(out.astype(jnp.float32), ref, atol=2e-2, rtol=2e-2), \
        "mismatch vs reference"

    print("KERNEL_OK")
</pallas_src>

<mosaic_0001>
module attributes {stable_mosaic.version = 11 : i64} {
  func.func @_projection_kernel(%arg0: i32, %arg1: i32, %arg2: memref<16x128xf32, #tpu.memory_space<vmem>>, %arg3: memref<128x128xbf16, #tpu.memory_space<vmem>>, %arg4: memref<1x128xf32, #tpu.memory_space<vmem>>, %arg5: memref<16x128xbf16, #tpu.memory_space<vmem>>) attributes {dimension_semantics = [#tpu.dimension_semantics<parallel>, #tpu.dimension_semantics<parallel>], iteration_bounds = array<i64: 1, 1>, scalar_prefetch = 0 : i64, scratch_operands = 0 : i64, tpu.core_type = #tpu.core_type<tc>, window_params = [{transform_indices = @transform_0, window_bounds = array<i64: 16, 128>}, {pipeline_mode = #tpu.pipeline_mode<synchronous>, transform_indices = @transform_1, window_bounds = array<i64: 128, 128>}, {pipeline_mode = #tpu.pipeline_mode<synchronous>, transform_indices = @transform_2, window_bounds = array<i64: 1, 128>}, {transform_indices = @transform_3, window_bounds = array<i64: 16, 128>}]} {
    %c0 = arith.constant 0 : index
    %c0_0 = arith.constant 0 : index
    %0 = vector.load %arg2[%c0, %c0_0] : memref<16x128xf32, #tpu.memory_space<vmem>>, vector<16x128xf32>
    %1 = arith.truncf %0 : vector<16x128xf32> to vector<16x128xbf16>
    %c0_1 = arith.constant 0 : index
    %c0_2 = arith.constant 0 : index
    %2 = vector.load %arg3[%c0_1, %c0_2] : memref<128x128xbf16, #tpu.memory_space<vmem>>, vector<128x128xbf16>
    %cst = arith.constant dense<0.000000e+00> : vector<16x128xf32>
    %3 = tpu.matmul %1, %2, %cst {dimension_numbers = #tpu.dot_dimension_numbers<[1], [0], [0], [1], [0, 0, 1, 1], [], []>} : vector<16x128xbf16>, vector<128x128xbf16>, vector<16x128xf32> -> vector<16x128xf32>
    %c0_3 = arith.constant 0 : index
    %c0_4 = arith.constant 0 : index
    %4 = vector.load %arg4[%c0_3, %c0_4] : memref<1x128xf32, #tpu.memory_space<vmem>>, vector<1x128xf32>
    %5 = vector.broadcast %4 : vector<1x128xf32> to vector<16x128xf32>
    %6 = arith.addf %3, %5 : vector<16x128xf32>
    %7 = arith.truncf %6 : vector<16x128xf32> to vector<16x128xbf16>
    %c0_5 = arith.constant 0 : index
    %c0_6 = arith.constant 0 : index
    %8 = vector.load %arg5[%c0_5, %c0_6] : memref<16x128xbf16, #tpu.memory_space<vmem>>, vector<16x128xbf16>
    tpu.vector_store %arg5[%c0_5, %c0_6], %7 {strides = array<i32>} : memref<16x128xbf16, #tpu.memory_space<vmem>>, vector<16x128xbf16>,
    return
  }
  func.func @transform_0(%arg0: i32, %arg1: i32) -> (i32, i32) {
    %c0_i32 = arith.constant 0 : i32
    %c0_i32_0 = arith.constant 0 : i32
    return %arg1, %c0_i32 : i32, i32
  }
  func.func @transform_1(%arg0: i32, %arg1: i32) -> (i32, i32) {
    %c0_i32 = arith.constant 0 : i32
    %c0_i32_0 = arith.constant 0 : i32
    return %c0_i32, %arg0 : i32, i32
  }
  func.func @transform_2(%arg0: i32, %arg1: i32) -> (i32, i32) {
    %c0_i32 = arith.constant 0 : i32
    %c0_i32_0 = arith.constant 0 : i32
    return %c0_i32, %arg0 : i32, i32
  }
  func.func @transform_3(%arg0: i32, %arg1: i32) -> (i32, i32) {
    %c0_i32 = arith.constant 0 : i32
    return %arg1, %arg0 : i32, i32
  }
}

module attributes {stable_mosaic.version = 11 : i64} {
  func.func @_projection_kernel(%arg0: i32, %arg1: i32, %arg2: memref<16x128xf32, #tpu.memory_space<vmem>>, %arg3: memref<128x128xbf16, #tpu.memory_space<vmem>>, %arg4: memref<1x128xf32, #tpu.memory_space<vmem>>, %arg5: memref<16x128xbf16, #tpu.memory_space<vmem>>) attributes {dimension_semantics = [#tpu.dimension_semantics<parallel>, #tpu.dimension_semantics<parallel>], iteration_bounds = array<i64: 1, 1>, scalar_prefetch = 0 : i64, scratch_operands = 0 : i64, tpu.core_type = #tpu.core_type<tc>, window_params = [{transform_indices = @transform_0, window_bounds = array<i64: 16, 128>}, {transform_indices = @transform_1, window_bounds = array<i64: 128, 128>}, {transform_indices = @transform_2, window_bounds = array<i64: 1, 128>}, {transform_indices = @transform_3, window_bounds = array<i64: 16, 128>}]} {
    %c0 = arith.constant 0 : index
    %c0_0 = arith.constant 0 : index
    %0 = vector.load %arg2[%c0, %c0_0] : memref<16x128xf32, #tpu.memory_space<vmem>>, vector<16x128xf32>
    %1 = arith.truncf %0 : vector<16x128xf32> to vector<16x128xbf16>
    %c0_1 = arith.constant 0 : index
    %c0_2 = arith.constant 0 : index
    %2 = vector.load %arg3[%c0_1, %c0_2] : memref<128x128xbf16, #tpu.memory_space<vmem>>, vector<128x128xbf16>
    %cst = arith.constant dense<0.000000e+00> : vector<16x128xf32>
    %3 = tpu.matmul %1, %2, %cst {dimension_numbers = #tpu.dot_dimension_numbers<[1], [0], [0], [1], [0, 0, 1, 1], [], []>} : vector<16x128xbf16>, vector<128x128xbf16>, vector<16x128xf32> -> vector<16x128xf32>
    %c0_3 = arith.constant 0 : index
    %c0_4 = arith.constant 0 : index
    %4 = vector.load %arg4[%c0_3, %c0_4] : memref<1x128xf32, #tpu.memory_space<vmem>>, vector<1x128xf32>
    %5 = vector.broadcast %4 : vector<1x128xf32> to vector<16x128xf32>
    %6 = arith.addf %3, %5 : vector<16x128xf32>
    %7 = arith.truncf %6 : vector<16x128xf32> to vector<16x128xbf16>
    %c0_5 = arith.constant 0 : index
    %c0_6 = arith.constant 0 : index
    %8 = vector.load %arg5[%c0_5, %c0_6] : memref<16x128xbf16, #tpu.memory_space<vmem>>, vector<16x128xbf16>
    tpu.vector_store %arg5[%c0_5, %c0_6], %7 {strides = array<i32>} : memref<16x128xbf16, #tpu.memory_space<vmem>>, vector<16x128xbf16>,
    return
  }
  func.func @transform_0(%arg0: i32, %arg1: i32) -> (i32, i32) {
    %c0_i32 = arith.constant 0 : i32
    %c0_i32_0 = arith.constant 0 : i32
    return %arg1, %c0_i32 : i32, i32
  }
  func.func @transform_1(%arg0: i32, %arg1: i32) -> (i32, i32) {
    %c0_i32 = arith.constant 0 : i32
    %c0_i32_0 = arith.constant 0 : i32
    return %c0_i32, %arg0 : i32, i32
  }
  func.func @transform_2(%arg0: i32, %arg1: i32) -> (i32, i32) {
    %c0_i32 = arith.constant 0 : i32
    %c0_i32_0 = arith.constant 0 : i32
    return %c0_i32, %arg0 : i32, i32
  }
  func.func @transform_3(%arg0: i32, %arg1: i32) -> (i32, i32) {
    %c0_i32 = arith.constant 0 : i32
    return %arg1, %arg0 : i32, i32
  }
}

</mosaic_0001>

<bundles_post_ra>
// kernel: tpu_custom_call.1
= control target key start
LH: loop header
LB: loop body
LE: loop exit
PB: predicated region body
PF: predicated region fallthrough
CT: control target
= control target key end

     0   :  { %8 = vsyncpa [#allocation3], 0  ;;  %s364_s0 = inlined_call_operand.hbm [shape: f32[16,128], index: 0, kind: input, shape index: {}]   ;;  %s365_s1 = inlined_call_operand.hbm [shape: bf16[128,128], index: 1, kind: input, shape index: {}]   ;;  %s366_s2 = inlined_call_operand.vmem [shape: f32[1,128], index: 2, kind: input, shape index: {}]   ;;  %s367_s3 = inlined_call_operand.hbm [shape: bf16[16,128], index: 3, kind: output, shape index: {}]  }
   0x1   :  { %9 = vsyncpa [#allocation6], 0 }
   0x2   :  { %10 = vsyncpa [#allocation4], 0  ;;  %s317_s12 = smov [#allocation2]  }
   0x3   :  { %s16_s13 = sshll.u32 %s317_s12, 4  ;;  %s17_s13 = int_to_ptr.vmem [resolvable:$true] %s16_s13 }
   0x4   :  { %s259_s14 = scalar_lea.vmem %s17_s13, 256  ;;  %p264_p1 = scmp.lt.s32.totalorder %s17_s13, %s17_s13 }
   0x5   :  { %p260_p0 = scmp.ne.s32.totalorder %s17_s13, %s259_s14  ;;  %p265_p2 = scmp.lt.s32.totalorder %s259_s14, %s259_s14 }
   0x7   :  { %p266_p3 = por %p265_p2, %p264_p1 }
   0x9   :  { %p267_p4 = pnand %p266_p3, %p260_p0 }
   0xb   :  { %270 = shalt.err (!%p267_p4)
}
   0xc   :  { %s318_s15 = smov 128   ;;  %s319_s16 = smov 8  }
   0xd   :  { %22 = dma.hbm_to_vmem [thread:$0]  %s364_s0, 256, %s17_s13, [#allocation3], %s318_s15, %s318_s15, %s319_s16  }
   0xe   :  { %s320_s19 = smov [#allocation5]  }
   0xf   :  { %s28_s20 = sshll.u32 %s320_s19, 4  ;;  %s29_s20 = int_to_ptr.vmem [resolvable:$true] %s28_s20 }
  0x10   :  { %s279_s21 = scalar_lea.vmem %s29_s20, 1024  ;;  %p284_p6 = scmp.lt.s32.totalorder %s29_s20, %s29_s20 }
  0x11   :  { %p280_p5 = scmp.ne.s32.totalorder %s29_s20, %s279_s21  ;;  %p285_p7 = scmp.lt.s32.totalorder %s279_s21, %s279_s21 }
  0x13   :  { %p286_p8 = por %p285_p7, %p284_p6 }
  0x15   :  { %p287_p9 = pnand %p286_p8, %p280_p5 }
  0x17   :  { %290 = shalt.err (!%p287_p9)
}
  0x18   :  { %s321_s22 = smov 64   ;;  %s322_s23 = smov 4  }
  0x19   :  { %34 = dma.hbm_to_vmem [thread:$0]  %s365_s1, 1024, %s29_s20, [#allocation6], %s321_s22, %s321_s22, %s322_s23  }
  0x1a   :  { %311 = dma.done.wait [#allocation3], 256  }
  0x1b   :  { %312 = vsyncadd [#allocation3], 4294967040 }
  0x1c   :  { %313 = dma.done.wait [#allocation6], 1024  }
  0x1d   :  { %314 = vsyncadd [#allocation6], 4294966272  ;;  %v323_v0 = vmov 0.0   ;;  %vm324_vm0 = vmmov 0   ;;  %v243_v1 = vld [vmem:[#allocation5 + $0x38] sm:$0xff]   ;;  %v244_v2 = vld [vmem:[#allocation5 + $0x30] sm:$0xff]  }
  0x1e   :  { %214 = vmatprep.subr.bf16.mxu0 %v323_v0  ;;  %230 = vmatprep.mubr.msk.bf16.mxu0 %vm324_vm0, %v323_v0  ;;  %v245_v3 = vld [vmem:[#allocation5 + $0x28] sm:$0xff]   ;;  %v246_v4 = vld [vmem:[#allocation5 + $0x20] sm:$0xff]   ;;  %v247_v5 = vld [vmem:[#allocation5 + $0x18] sm:$0xff]   ;;  %s325_s26 = smov [#allocation7]  }
  0x1f   :  { %215 = vmatpush3.bf16.msra.mxu0 %v243_v1  ;;  %v248_v6 = vld [vmem:[#allocation5 + $0x10] sm:$0xff]   ;;  %v249_v7 = vld [vmem:[#allocation5 + $0x8] sm:$0xff]   ;;  %v250_v8 = vld [vmem:[#allocation5] sm:$0xff]   ;;  %s174_s27 = sshll.u32 %s325_s26, 4  ;;  %s175_s27 = int_to_ptr.vmem [resolvable:$true] %s174_s27 }
  0x20   :  { %216 = vmatprep.subr.bf16.mxu0 %v323_v0  ;;  %v44_v9 = vld [vmem:[#allocation2] sm:$0xff]  ;;  %v45_v10 = vld [vmem:[#allocation2 + $0x8] sm:$0xff]  ;;  %s291_s28 = scalar_lea.vmem %s175_s27, 128  ;;  %p296_p11 = scmp.lt.s32.totalorder %s175_s27, %s175_s27 }
  0x21   :  { %v46_v11 = vpack.c.bf16 %v45_v10, %v44_v9  ;;  %v187_v13 = vld [vmem:[%s366_s2] ss:$0 sm:$0xff]  ;;  %p292_p10 = scmp.ne.s32.totalorder %s175_s27, %s291_s28  ;;  %p297_p12 = scmp.lt.s32.totalorder %s291_s28, %s291_s28 }
  0x23   :  { %217 = vmatpush3.bf16.msra.mxu0 %v244_v2  ;;  %p298_p13 = por %p297_p12, %p296_p11 }
  0x24   :  { %218 = vmatprep.subr.bf16.mxu0 %v323_v0 }
  0x25   :  { %p299_p0 = pnand %p298_p13, %p292_p10 }
  0x27   :  { %219 = vmatpush3.bf16.msra.mxu0 %v245_v3 }
  0x28   :  { %220 = vmatprep.subr.bf16.mxu0 %v323_v0 }
  0x2b   :  { %221 = vmatpush3.bf16.msra.mxu0 %v246_v4 }
  0x2c   :  { %222 = vmatprep.subr.bf16.mxu0 %v323_v0 }
  0x2f   :  { %223 = vmatpush3.bf16.msra.mxu0 %v247_v5 }
  0x30   :  { %224 = vmatprep.subr.bf16.mxu0 %v323_v0 }
  0x33   :  { %225 = vmatpush3.bf16.msra.mxu0 %v248_v6 }
  0x34   :  { %226 = vmatprep.subr.bf16.mxu0 %v323_v0 }
  0x37   :  { %227 = vmatpush3.bf16.msra.mxu0 %v249_v7 }
  0x38   :  { %228 = vmatprep.subr.bf16.mxu0 %v323_v0 }
  0x3b   :  { %229 = vmatpush3.bf16.msra.mxu0 %v250_v8 }
  0x3e   :  { %231 = vmatmul.mubr.bf16.vlgmr.msra.gmra.mxu0 %v46_v11 }
  0xfe   :  { %v152_v12 = vpop.f32.mrf.mxu0 }
  0xff   :  { %v153_v16 = vadd.f32 %v187_v13, %v152_v12 }
 0x100   :  { %v232_v14 = vpop.f32.mrf.mxu0 }
 0x102   :  { %v155_v15 = vpop.f32.mrf.mxu0 }
 0x103   :  { %v156_v17 = vadd.f32 %v187_v13, %v155_v15 }
 0x104   :  { %v233_v18 = vpop.f32.mrf.mxu0 }
 0x105   :  { %v203_v19 = vpack.c.bf16 %v156_v17, %v153_v16 }
 0x107   :  { %204 = vst [vmem:[#allocation7] sm:$0xff] %v203_v19  }
 0x108   :  { %302 = shalt.err (!%p299_p0)
}
 0x109   :  { %180 = dma.vmem_to_hbm [thread:$0]  %s175_s27, 128, %s367_s3, [#allocation4], %s321_s22, %s321_s22, %s322_s23  }
 0x10a   :  { %315 = dma.done.wait [#allocation4], 128  }
 0x10b   :  { %316 = vsyncadd [#allocation4], 4294967168 }
 0x10c   :  { %184 = vsyncpa [#allocation3], 1 }
 0x10d   :  { %185 = vsyncpa [#allocation6], 1 }
 0x10e   :  { %186 = vsyncpa [#allocation4], 1 }

// kernel: tpu_custom_call.1
= control target key start
LH: loop header
LB: loop body
LE: loop exit
PB: predicated region body
PF: predicated region fallthrough
CT: control target
= control target key end

     0   :  { %8 = vsyncpa [#allocation3], 0  ;;  %s364_s0 = inlined_call_operand.hbm [shape: f32[16,128], index: 0, kind: input, shape index: {}]   ;;  %s365_s1 = inlined_call_operand.hbm [shape: bf16[128,128], index: 1, kind: input, shape index: {}]   ;;  %s366_s2 = inlined_call_operand.vmem [shape: f32[1,128], index: 2, kind: input, shape index: {}]   ;;  %s367_s3 = inlined_call_operand.hbm [shape: bf16[16,128], index: 3, kind: output, shape index: {}]  }
   0x1   :  { %9 = vsyncpa [#allocation6], 0 }
   0x2   :  { %10 = vsyncpa [#allocation4], 0  ;;  %s317_s12 = smov [#allocation2]  }
   0x3   :  { %s16_s13 = sshll.u32 %s317_s12, 4  ;;  %s17_s13 = int_to_ptr.vmem [resolvable:$true] %s16_s13 }
   0x4   :  { %s259_s14 = scalar_lea.vmem %s17_s13, 256  ;;  %p264_p1 = scmp.lt.s32.totalorder %s17_s13, %s17_s13 }
   0x5   :  { %p260_p0 = scmp.ne.s32.totalorder %s17_s13, %s259_s14  ;;  %p265_p2 = scmp.lt.s32.totalorder %s259_s14, %s259_s14 }
   0x7   :  { %p266_p3 = por %p265_p2, %p264_p1 }
   0x9   :  { %p267_p4 = pnand %p266_p3, %p260_p0 }
   0xb   :  { %270 = shalt.err (!%p267_p4)
}
   0xc   :  { %s318_s15 = smov 128   ;;  %s319_s16 = smov 8  }
   0xd   :  { %22 = dma.hbm_to_vmem [thread:$0]  %s364_s0, 256, %s17_s13, [#allocation3], %s318_s15, %s318_s15, %s319_s16  }
   0xe   :  { %s320_s19 = smov [#allocation5]  }
   0xf   :  { %s28_s20 = sshll.u32 %s320_s19, 4  ;;  %s29_s20 = int_to_ptr.vmem [resolvable:$true] %s28_s20 }
  0x10   :  { %s279_s21 = scalar_lea.vmem %s29_s20, 1024  ;;  %p284_p6 = scmp.lt.s32.totalorder %s29_s20, %s29_s20 }
  0x11   :  { %p280_p5 = scmp.ne.s32.totalorder %s29_s20, %s279_s21  ;;  %p285_p7 = scmp.lt.s32.totalorder %s279_s21, %s279_s21 }
  0x13   :  { %p286_p8 = por %p285_p7, %p284_p6 }
  0x15   :  { %p287_p9 = pnand %p286_p8, %p280_p5 }
  0x17   :  { %290 = shalt.err (!%p287_p9)
}
  0x18   :  { %s321_s22 = smov 64   ;;  %s322_s23 = smov 4  }
  0x19   :  { %34 = dma.hbm_to_vmem [thread:$0]  %s365_s1, 1024, %s29_s20, [#allocation6], %s321_s22, %s321_s22, %s322_s23  }
  0x1a   :  { %311 = dma.done.wait [#allocation3], 256  }
  0x1b   :  { %312 = vsyncadd [#allocation3], 4294967040 }
  0x1c   :  { %313 = dma.done.wait [#allocation6], 1024  }
  0x1d   :  { %314 = vsyncadd [#allocation6], 4294966272  ;;  %v323_v0 = vmov 0.0   ;;  %vm324_vm0 = vmmov 0   ;;  %v243_v1 = vld [vmem:[#allocation5 + $0x38] sm:$0xff]   ;;  %v244_v2 = vld [vmem:[#allocation5 + $0x30] sm:$0xff]  }
  0x1e   :  { %214 = vmatprep.subr.bf16.mxu0 %v323_v0  ;;  %230 = vmatprep.mubr.msk.bf16.mxu0 %vm324_vm0, %v323_v0  ;;  %v245_v3 = vld [vmem:[#allocation5 + $0x28] sm:$0xff]   ;;  %v246_v4 = vld [vmem:[#allocation5 + $0x20] sm:$0xff]   ;;  %v247_v5 = vld [vmem:[#allocation5 + $0x18] sm:$0xff]   ;;  %s325_s26 = smov [#allocation7]  }
  0x1f   :  { %215 = vmatpush3.bf16.msra.mxu0 %v243_v1  ;;  %v248_v6 = vld [vmem:[#allocation5 + $0x10] sm:$0xff]   ;;  %v249_v7 = vld [vmem:[#allocation5 + $0x8] sm:$0xff]   ;;  %v250_v8 = vld [vmem:[#allocation5] sm:$0xff]   ;;  %s174_s27 = sshll.u32 %s325_s26, 4  ;;  %s175_s27 = int_to_ptr.vmem [resolvable:$true] %s174_s27 }
  0x20   :  { %216 = vmatprep.subr.bf16.mxu0 %v323_v0  ;;  %v44_v9 = vld [vmem:[#allocation2] sm:$0xff]  ;;  %v45_v10 = vld [vmem:[#allocation2 + $0x8] sm:$0xff]  ;;  %s291_s28 = scalar_lea.vmem %s175_s27, 128  ;;  %p296_p11 = scmp.lt.s32.totalorder %s175_s27, %s175_s27 }
  0x21   :  { %v46_v11 = vpack.c.bf16 %v45_v10, %v44_v9  ;;  %v187_v13 = vld [vmem:[%s366_s2] ss:$0 sm:$0xff]  ;;  %p292_p10 = scmp.ne.s32.totalorder %s175_s27, %s291_s28  ;;  %p297_p12 = scmp.lt.s32.totalorder %s291_s28, %s291_s28 }
  0x23   :  { %217 = vmatpush3.bf16.msra.mxu0 %v244_v2  ;;  %p298_p13 = por %p297_p12, %p296_p11 }
  0x24   :  { %218 = vmatprep.subr.bf16.mxu0 %v323_v0 }
  0x25   :  { %p299_p0 = pnand %p298_p13, %p292_p10 }
  0x27   :  { %219 = vmatpush3.bf16.msra.mxu0 %v245_v3 }
  0x28   :  { %220 = vmatprep.subr.bf16.mxu0 %v323_v0 }
  0x2b   :  { %221 = vmatpush3.bf16.msra.mxu0 %v246_v4 }
  0x2c   :  { %222 = vmatprep.subr.bf16.mxu0 %v323_v0 }
  0x2f   :  { %223 = vmatpush3.bf16.msra.mxu0 %v247_v5 }
  0x30   :  { %224 = vmatprep.subr.bf16.mxu0 %v323_v0 }
  0x33   :  { %225 = vmatpush3.bf16.msra.mxu0 %v248_v6 }
  0x34   :  { %226 = vmatprep.subr.bf16.mxu0 %v323_v0 }
  0x37   :  { %227 = vmatpush3.bf16.msra.mxu0 %v249_v7 }
  0x38   :  { %228 = vmatprep.subr.bf16.mxu0 %v323_v0 }
  0x3b   :  { %229 = vmatpush3.bf16.msra.mxu0 %v250_v8 }
  0x3e   :  { %231 = vmatmul.mubr.bf16.vlgmr.msra.gmra.mxu0 %v46_v11 }
  0xfe   :  { %v152_v12 = vpop.f32.mrf.mxu0 }
  0xff   :  { %v153_v16 = vadd.f32 %v187_v13, %v152_v12 }
 0x100   :  { %v232_v14 = vpop.f32.mrf.mxu0 }
 0x102   :  { %v155_v15 = vpop.f32.mrf.mxu0 }
 0x103   :  { %v156_v17 = vadd.f32 %v187_v13, %v155_v15 }
 0x104   :  { %v233_v18 = vpop.f32.mrf.mxu0 }
 0x105   :  { %v203_v19 = vpack.c.bf16 %v156_v17, %v153_v16 }
 0x107   :  { %204 = vst [vmem:[#allocation7] sm:$0xff] %v203_v19  }
 0x108   :  { %302 = shalt.err (!%p299_p0)
}
 0x109   :  { %180 = dma.vmem_to_hbm [thread:$0]  %s175_s27, 128, %s367_s3, [#allocation4], %s321_s22, %s321_s22, %s322_s23  }
 0x10a   :  { %315 = dma.done.wait [#allocation4], 128  }
 0x10b   :  { %316 = vsyncadd [#allocation4], 4294967168 }
 0x10c   :  { %184 = vsyncpa [#allocation3], 1 }
 0x10d   :  { %185 = vsyncpa [#allocation6], 1 }
 0x10e   :  { %186 = vsyncpa [#allocation4], 1 }

</bundles_post_ra>
